<compile_context>
chip_gen: v6e
topology: v6e:2x2x1
jax: 0.10.0
libtpu: 0.0.40
codegen_flags: <defaults>
</compile_context>

<pallas_src>
import functools

import jax
import jax.numpy as jnp
from jax import lax
from jax.experimental import pallas as pl
from jax.experimental.pallas import tpu as pltpu


def _round_up(x, m):
    return ((x + m - 1) // m) * m


def _attn_kernel(dec_proj_ref,   # VMEM [TB, A]    f32   : h_dec @ W_dec + b (hoisted)
                 h_enc_ref,      # VMEM [TB, S, H] compute dtype
                 w_enc_ref,      # VMEM [H, A]     compute dtype
                 v_ref,          # VMEM [1, A]     f32
                 src_lens_ref,   # VMEM [TB, 1]    int32
                 ctx_ref,        # VMEM [TB, H]    out dtype
                 weights_ref,    # VMEM [TB, S]    out dtype
                 score_ref,      # VMEM [TB, S]    f32 scratch (raw scores)
                 *, s_real, chunk_s, n_chunks, approx_recip):
    tb, s_p, h_p = h_enc_ref.shape
    a_p = w_enc_ref.shape[1]

    dec_proj = dec_proj_ref[...]                  # [TB, A] f32
    w_enc = w_enc_ref[...]                        # [H, A]  compute dtype
    v = v_ref[...]                                # [1, A]  f32

    # ---- score pipeline, chunked over S: matmul -> +dec -> tanh -> <., v> ----
    def score_chunk(c, carry=None):
        start = c * chunk_s
        if not isinstance(c, int):
            start = pl.multiple_of(start, chunk_s)
        he = h_enc_ref[:, pl.ds(start, chunk_s), :]            # [TB, C, H]
        pre = jnp.dot(he.reshape(tb * chunk_s, h_p), w_enc,
                      preferred_element_type=jnp.float32)      # [TB*C, A] f32
        z = jnp.tanh(pre.reshape(tb, chunk_s, a_p) + dec_proj[:, None, :])
        score_ref[:, pl.ds(start, chunk_s)] = jnp.sum(z * v, axis=-1)
        return carry

    if n_chunks == 1:
        score_chunk(0)
    else:
        lax.fori_loop(0, n_chunks, score_chunk, None, unroll=(n_chunks <= 4))

    # ---- mask + softmax over S (lane axis), all in f32 ----
    score = score_ref[...]                                     # [TB, S_p]
    idx = lax.broadcasted_iota(jnp.int32, (tb, s_p), 1)
    # positions >= src_len: -1e10 (matches masked_fill in the module)
    score = jnp.where(idx < src_lens_ref[...], score, jnp.float32(-1e10))
    if s_p > s_real:
        # S-padding columns get exactly zero weight, so src_len == 0 rows still
        # normalize over the real S positions (like the reference).
        score = jnp.where(idx < s_real, score, -jnp.inf)

    m = jnp.max(score, axis=-1, keepdims=True)
    e = jnp.exp(score - m)
    denom = jnp.sum(e, axis=-1, keepdims=True)
    wgt = e * pl.reciprocal(denom, approx=approx_recip)        # [TB, S_p] f32

    # ---- context: batched MXU contraction over S (no [TB,S,H] intermediate) ----
    wgt_cd = wgt.astype(h_enc_ref.dtype)
    ctx = jnp.einsum('bqs,bsh->bqh', wgt_cd[:, None, :], h_enc_ref[...],
                     preferred_element_type=jnp.float32)       # [TB, 1, H]

    ctx_ref[...] = ctx[:, 0, :].astype(ctx_ref.dtype)
    weights_ref[...] = wgt.astype(weights_ref.dtype)


def _vmem_budget_bytes():
    """Generation-aware scoped-VMEM budget (headroom below physical)."""
    cap = 64 << 20                         # conservative default (v7x physical)
    try:
        info = pltpu.get_tpu_info()
        cap = int(getattr(info, "vmem_capacity_bytes", cap)) or cap
    except Exception:
        pass
    return (cap * 3) // 4                  # ~48 MiB on v7x, ~96 MiB on v5e/v6e


def seq2seq_attention(h_dec, h_enc, src_lens, w, b, v, *,
                      block_batch=None, compute_dtype=jnp.bfloat16,
                      out_dtype=jnp.float32, approx_recip=None):
    """Pallas forward of Seq2SeqAttention.

    h_dec [N, hs_dec], h_enc [N, S, hs_enc], src_lens [N],
    w [attn, hs_dec + hs_enc] (PyTorch Linear layout), b [attn], v [attn].
    Returns (ctx [N, hs_enc], weights [N, S]) in out_dtype.
    """
    N, S, hs_enc = h_enc.shape
    hs_dec = h_dec.shape[1]
    attn = w.shape[0]

    if approx_recip is None:
        approx_recip = (jnp.dtype(compute_dtype) != jnp.dtype(jnp.float32))

    # Split the concat-Linear; hoist the decoder half out of the kernel.
    w_dec = w[:, :hs_dec]                                 # [attn, hs_dec]
    w_enc = jnp.transpose(w[:, hs_dec:])                  # [hs_enc, attn]
    dec_proj = (h_dec.astype(jnp.float32)
                @ jnp.transpose(w_dec).astype(jnp.float32)
                + b.astype(jnp.float32))                  # [N, attn] f32 (cheap XLA)

    itemsize = jnp.dtype(compute_dtype).itemsize
    align_s = 16 if itemsize == 2 else 8                  # bf16 packs 2 rows/sublane
    h_p = _round_up(hs_enc, 128)                          # lane alignment
    a_p = _round_up(attn, 128)                            # lane alignment
    s_align = _round_up(S, align_s)
    n_8 = _round_up(max(N, 1), 8)

    vmem_budget = _vmem_budget_bytes()

    # ---- batch tile: size the streamed h_enc block (~4 MiB); multiple of 32
    # when possible so M = tb*chunk_s feeds the 256-wide MXU on v6e/v7x. ----
    if block_batch is None:
        target_block_bytes = 4 << 20
        tb = target_block_bytes // max(1, s_align * h_p * itemsize)
        tb = max(8, min(tb, n_8))
        tb = (tb // 32) * 32 if tb >= 32 else _round_up(tb, 8)
    else:
        tb = min(_round_up(block_batch, 8), n_8)
    tb = max(8, min(tb, n_8))

    # ---- S chunking for the score pipeline (bounds the f32 intermediates) ----
    z_budget = 2 << 20                                    # per-chunk f32 bytes
    max_chunk = max(align_s, z_budget // max(1, tb * a_p * 4))
    if max_chunk >= S:
        chunk_s = _round_up(S, align_s)
    else:
        chunk_s = max(128, (max_chunk // 128) * 128)      # lane-aligned chunk stores
    s_p = _round_up(S, chunk_s)
    n_chunks = s_p // chunk_s

    # ---- shrink tb until the (double-buffered) working set fits the budget ----
    def vmem_estimate(tb_):
        return (2 * tb_ * s_p * h_p * itemsize            # h_enc block (x2 buffers)
                + 2 * tb_ * a_p * 4                       # dec_proj
                + 2 * h_p * a_p * itemsize                # w_enc
                + 2 * a_p * 4                             # v
                + 2 * tb_ * 128 * 4                       # src_lens (lane-padded)
                + 2 * tb_ * h_p * 4                       # ctx out
                + 2 * tb_ * s_p * 4                       # weights out
                + tb_ * s_p * 4                           # score scratch
                + 2 * tb_ * chunk_s * a_p * 4)            # live chunk intermediates

    while tb > 8 and vmem_estimate(tb) > vmem_budget:
        tb = max(8, (tb // 2) // 8 * 8)

    n_blocks = -(-N // tb)
    n_p = n_blocks * tb

    # ---- pad to aligned shapes (padded rows/cols are zero or masked) ----
    h_enc_p = jnp.pad(h_enc, ((0, n_p - N), (0, s_p - S), (0, h_p - hs_enc))
                      ).astype(compute_dtype)
    w_enc_p = jnp.pad(w_enc, ((0, h_p - hs_enc), (0, a_p - attn))
                      ).astype(compute_dtype)
    dec_proj_p = jnp.pad(dec_proj, ((0, n_p - N), (0, a_p - attn)))
    v_p = jnp.pad(v.astype(jnp.float32), (0, a_p - attn)).reshape(1, a_p)
    lens_p = jnp.pad(src_lens.astype(jnp.int32), (0, n_p - N)).reshape(n_p, 1)

    kernel = functools.partial(_attn_kernel, s_real=S, chunk_s=chunk_s,
                               n_chunks=n_chunks, approx_recip=approx_recip)

    ctx_p, weights_p = pl.pallas_call(
        kernel,
        out_shape=(
            jax.ShapeDtypeStruct((n_p, h_p), out_dtype),
            jax.ShapeDtypeStruct((n_p, s_p), out_dtype),
        ),
        grid=(n_blocks,),
        in_specs=[
            pl.BlockSpec((tb, a_p), lambda i: (i, 0)),          # dec_proj
            pl.BlockSpec((tb, s_p, h_p), lambda i: (i, 0, 0)),  # h_enc (streamed)
            pl.BlockSpec((h_p, a_p), lambda i: (0, 0)),         # w_enc (resident)
            pl.BlockSpec((1, a_p), lambda i: (0, 0)),           # v
            pl.BlockSpec((tb, 1), lambda i: (i, 0)),            # src_lens
        ],
        out_specs=(
            pl.BlockSpec((tb, h_p), lambda i: (i, 0)),          # ctx
            pl.BlockSpec((tb, s_p), lambda i: (i, 0)),          # weights
        ),
        scratch_shapes=[pltpu.VMEM((tb, s_p), jnp.float32)],    # raw scores
        compiler_params=pltpu.CompilerParams(
            dimension_semantics=("parallel",),
            vmem_limit_bytes=int(vmem_budget)),
        # TODO(synk): add pipeline_mode=pl.Buffered(3) on the h_enc spec if the
        # DMA is still exposed after tile sizing (watch the v7x 64 MiB budget).
    )(dec_proj_p, h_enc_p, w_enc_p, v_p, lens_p)

    return ctx_p[:N, :hs_enc], weights_p[:N, :S]


def _reference(h_dec, h_enc, src_lens, w, b, v):
    N, S, _ = h_enc.shape
    hd = jnp.repeat(h_dec[:, None, :], S, axis=1)
    attn_input = jnp.concatenate([hd, h_enc], axis=-1)
    attn_out = jnp.tanh(attn_input @ w.T + b)
    score = jnp.einsum('a,nsa->ns', v, attn_out)
    idx = jnp.arange(S)[None, :]
    mask = idx < src_lens[:, None]
    score = jnp.where(mask, score, -1e10)
    weights = jax.nn.softmax(score, axis=-1)
    ctx = jnp.einsum('ns,nsh->nh', weights, h_enc)
    return ctx, weights


if __name__ == "__main__":
    # Small, deterministic example shapes.
    N, S = 16, 8
    hs_enc, hs_dec, attn_size = 32, 32, 32

    key = jax.random.PRNGKey(0)
    k1, k2, k3, k4, k5, k6 = jax.random.split(key, 6)

    h_dec = jax.random.normal(k1, (N, hs_dec), dtype=jnp.float32)
    h_enc = jax.random.normal(k2, (N, S, hs_enc), dtype=jnp.float32)
    src_lens = jax.random.randint(k6, (N,), 1, S + 1).astype(jnp.int32)

    fan_in = hs_enc + hs_dec
    bound_w = jnp.sqrt(6.0 / fan_in)        # kaiming_uniform_ on the Linear weight
    w = jax.random.uniform(k3, (attn_size, fan_in), dtype=jnp.float32,
                           minval=-bound_w, maxval=bound_w)
    bound_b = 1.0 / jnp.sqrt(fan_in)
    b = jax.random.uniform(k4, (attn_size,), dtype=jnp.float32,
                           minval=-bound_b, maxval=bound_b)
    v = jax.random.normal(k5, (attn_size,), dtype=jnp.float32)

    ctx_ref, weights_ref = _reference(h_dec, h_enc, src_lens, w, b, v)

    # Exact-semantics check: f32 compute, exact reciprocal, multi-block grid.
    ctx32, w32 = seq2seq_attention(h_dec, h_enc, src_lens, w, b, v,
                                   block_batch=8, compute_dtype=jnp.float32)
    jax.block_until_ready((ctx32, w32))
    assert ctx32.shape == (N, hs_enc) and w32.shape == (N, S)
    assert jnp.allclose(ctx32, ctx_ref, atol=1e-4, rtol=1e-4)
    assert jnp.allclose(w32, weights_ref, atol=1e-4, rtol=1e-4)

    # Fast path: bf16 matmul inputs, auto tile sizing, approx EUP reciprocal.
    ctx16, w16 = seq2seq_attention(h_dec, h_enc, src_lens, w, b, v,
                                   compute_dtype=jnp.bfloat16)
    jax.block_until_ready((ctx16, w16))
    assert ctx16.shape == (N, hs_enc) and w16.shape == (N, S)
    assert jnp.allclose(ctx16, ctx_ref, atol=1e-1, rtol=1e-1)
    assert jnp.allclose(w16, weights_ref, atol=1e-1, rtol=1e-1)

    print("KERNEL_OK")
</pallas_src>

<mosaic_0001>
module attributes {stable_mosaic.version = 11 : i64} {
  func.func @_attn_kernel(%arg0: i32, %arg1: memref<8x128xf32, #tpu.memory_space<vmem>>, %arg2: memref<8x8x128xf32, #tpu.memory_space<vmem>>, %arg3: memref<128x128xf32, #tpu.memory_space<vmem>>, %arg4: memref<1x128xf32, #tpu.memory_space<vmem>>, %arg5: memref<8x1xi32, #tpu.memory_space<vmem>>, %arg6: memref<8x128xf32, #tpu.memory_space<vmem>>, %arg7: memref<8x8xf32, #tpu.memory_space<vmem>>, %arg8: memref<8x8xf32, #tpu.memory_space<vmem>>) attributes {dimension_semantics = [#tpu.dimension_semantics<parallel>], iteration_bounds = array<i64: 2>, scalar_prefetch = 0 : i64, scratch_operands = 1 : i64, tpu.core_type = #tpu.core_type<tc>, window_params = [{transform_indices = @transform_0, window_bounds = array<i64: 8, 128>}, {transform_indices = @transform_1, window_bounds = array<i64: 8, 8, 128>}, {pipeline_mode = #tpu.pipeline_mode<synchronous>, transform_indices = @transform_2, window_bounds = array<i64: 128, 128>}, {pipeline_mode = #tpu.pipeline_mode<synchronous>, transform_indices = @transform_3, window_bounds = array<i64: 1, 128>}, {transform_indices = @transform_4, window_bounds = array<i64: 8, 1>}, {transform_indices = @transform_5, window_bounds = array<i64: 8, 128>}, {transform_indices = @transform_6, window_bounds = array<i64: 8, 8>}]} {
    %c0 = arith.constant 0 : index
    %c0_0 = arith.constant 0 : index
    %0 = vector.load %arg1[%c0, %c0_0] : memref<8x128xf32, #tpu.memory_space<vmem>>, vector<8x128xf32>
    %c0_1 = arith.constant 0 : index
    %c0_2 = arith.constant 0 : index
    %1 = vector.load %arg3[%c0_1, %c0_2] : memref<128x128xf32, #tpu.memory_space<vmem>>, vector<128x128xf32>
    %c0_3 = arith.constant 0 : index
    %c0_4 = arith.constant 0 : index
    %2 = vector.load %arg4[%c0_3, %c0_4] : memref<1x128xf32, #tpu.memory_space<vmem>>, vector<1x128xf32>
    %c0_5 = arith.constant 0 : index
    %c0_6 = arith.constant 0 : index
    %c0_7 = arith.constant 0 : index
    %3 = vector.load %arg2[%c0_5, %c0_6, %c0_7] : memref<8x8x128xf32, #tpu.memory_space<vmem>>, vector<8x8x128xf32>
    %4 = vector.shape_cast %3 : vector<8x8x128xf32> to vector<64x128xf32>
    %cst = arith.constant dense<0.000000e+00> : vector<64x128xf32>
    %5 = tpu.matmul %4, %1, %cst {dimension_numbers = #tpu.dot_dimension_numbers<[1], [0], [0], [1], [0, 0, 1, 1], [], []>} : vector<64x128xf32>, vector<128x128xf32>, vector<64x128xf32> -> vector<64x128xf32>
    %6 = vector.shape_cast %5 : vector<64x128xf32> to vector<8x8x128xf32>
    %7 = vector.shape_cast %0 : vector<8x128xf32> to vector<8x1x128xf32>
    %8 = vector.broadcast %7 : vector<8x1x128xf32> to vector<8x8x128xf32>
    %9 = arith.addf %6, %8 : vector<8x8x128xf32>
    %10 = math.tanh %9 : vector<8x8x128xf32>
    %11 = vector.shape_cast %2 : vector<1x128xf32> to vector<1x1x128xf32>
    %12 = vector.broadcast %11 : vector<1x1x128xf32> to vector<8x8x128xf32>
    %13 = arith.mulf %10, %12 : vector<8x8x128xf32>
    %cst_8 = arith.constant dense<0.000000e+00> : vector<8x8xf32>
    %14 = vector.multi_reduction <add>, %13, %cst_8 [2] : vector<8x8x128xf32> to vector<8x8xf32>
    %c0_9 = arith.constant 0 : index
    %c0_10 = arith.constant 0 : index
    %15 = vector.load %arg8[%c0_9, %c0_10] : memref<8x8xf32, #tpu.memory_space<vmem>>, vector<8x8xf32>
    tpu.vector_store %arg8[%c0_9, %c0_10], %14 {strides = array<i32>} : memref<8x8xf32, #tpu.memory_space<vmem>>, vector<8x8xf32>,
    %c0_11 = arith.constant 0 : index
    %c0_12 = arith.constant 0 : index
    %16 = vector.load %arg8[%c0_11, %c0_12] : memref<8x8xf32, #tpu.memory_space<vmem>>, vector<8x8xf32>
    %17 = tpu.iota {dimensions = array<i32: 1>} : vector<8x8xi32>
    %c0_13 = arith.constant 0 : index
    %c0_14 = arith.constant 0 : index
    %18 = vector.load %arg5[%c0_13, %c0_14] : memref<8x1xi32, #tpu.memory_space<vmem>>, vector<8x1xi32>
    %19 = vector.broadcast %18 : vector<8x1xi32> to vector<8x8xi32>
    %20 = arith.cmpi slt, %17, %19 : vector<8x8xi32>
    %cst_15 = arith.constant -1.000000e+10 : f32
    %21 = vector.broadcast %cst_15 : f32 to vector<8x8xf32>
    %22 = arith.select %20, %16, %21 : vector<8x8xi1>, vector<8x8xf32>
    %cst_16 = arith.constant dense<0xFF800000> : vector<8xf32>
    %23 = vector.multi_reduction <maximumf>, %22, %cst_16 [1] : vector<8x8xf32> to vector<8xf32>
    %24 = vector.shape_cast %23 : vector<8xf32> to vector<8x1xf32>
    %25 = vector.broadcast %24 : vector<8x1xf32> to vector<8x8xf32>
    %26 = arith.subf %22, %25 : vector<8x8xf32>
    %27 = math.exp %26 : vector<8x8xf32>
    %cst_17 = arith.constant dense<0.000000e+00> : vector<8xf32>
    %28 = vector.multi_reduction <add>, %27, %cst_17 [1] : vector<8x8xf32> to vector<8xf32>
    %29 = vector.shape_cast %28 : vector<8xf32> to vector<8x1xf32>
    %30 = tpu.reciprocal %29 : vector<8x1xf32> -> vector<8x1xf32>
    %31 = vector.broadcast %30 : vector<8x1xf32> to vector<8x8xf32>
    %32 = arith.mulf %27, %31 : vector<8x8xf32>
    %33 = vector.shape_cast %32 : vector<8x8xf32> to vector<8x1x8xf32>
    %c0_18 = arith.constant 0 : index
    %c0_19 = arith.constant 0 : index
    %c0_20 = arith.constant 0 : index
    %34 = vector.load %arg2[%c0_18, %c0_19, %c0_20] : memref<8x8x128xf32, #tpu.memory_space<vmem>>, vector<8x8x128xf32>
    "tpu.trace_start"() <{level = 10 : i32, message = "bqs,bsh->bqh"}> : () -> ()
    %cst_21 = arith.constant dense<0.000000e+00> : vector<8x1x128xf32>
    %35 = tpu.matmul %33, %34, %cst_21 {dimension_numbers = #tpu.dot_dimension_numbers<[2], [1], [1], [2], [0, 0, 0, 1, 1, 2], [0], [0]>} : vector<8x1x8xf32>, vector<8x8x128xf32>, vector<8x1x128xf32> -> vector<8x1x128xf32>
    "tpu.trace_stop"() : () -> ()
    %36 = vector.shape_cast %35 : vector<8x1x128xf32> to vector<8x128xf32>
    %c0_22 = arith.constant 0 : index
    %c0_23 = arith.constant 0 : index
    %37 = vector.load %arg6[%c0_22, %c0_23] : memref<8x128xf32, #tpu.memory_space<vmem>>, vector<8x128xf32>
    tpu.vector_store %arg6[%c0_22, %c0_23], %36 {strides = array<i32>} : memref<8x128xf32, #tpu.memory_space<vmem>>, vector<8x128xf32>,
    %c0_24 = arith.constant 0 : index
    %c0_25 = arith.constant 0 : index
    %38 = vector.load %arg7[%c0_24, %c0_25] : memref<8x8xf32, #tpu.memory_space<vmem>>, vector<8x8xf32>
    tpu.vector_store %arg7[%c0_24, %c0_25], %32 {strides = array<i32>} : memref<8x8xf32, #tpu.memory_space<vmem>>, vector<8x8xf32>,
    return
  }
  func.func @transform_0(%arg0: i32) -> (i32, i32) {
    %c0_i32 = arith.constant 0 : i32
    %c0_i32_0 = arith.constant 0 : i32
    return %arg0, %c0_i32 : i32, i32
  }
  func.func @transform_1(%arg0: i32) -> (i32, i32, i32) {
    %c0_i32 = arith.constant 0 : i32
    %c0_i32_0 = arith.constant 0 : i32
    %c0_i32_1 = arith.constant 0 : i32
    return %arg0, %c0_i32, %c0_i32_0 : i32, i32, i32
  }
  func.func @transform_2(%arg0: i32) -> (i32, i32) {
    %c0_i32 = arith.constant 0 : i32
    %c0_i32_0 = arith.constant 0 : i32
    %c0_i32_1 = arith.constant 0 : i32
    return %c0_i32, %c0_i32_0 : i32, i32
  }
  func.func @transform_3(%arg0: i32) -> (i32, i32) {
    %c0_i32 = arith.constant 0 : i32
    %c0_i32_0 = arith.constant 0 : i32
    %c0_i32_1 = arith.constant 0 : i32
    return %c0_i32, %c0_i32_0 : i32, i32
  }
  func.func @transform_4(%arg0: i32) -> (i32, i32) {
    %c0_i32 = arith.constant 0 : i32
    %c0_i32_0 = arith.constant 0 : i32
    return %arg0, %c0_i32 : i32, i32
  }
  func.func @transform_5(%arg0: i32) -> (i32, i32) {
    %c0_i32 = arith.constant 0 : i32
    %c0_i32_0 = arith.constant 0 : i32
    return %arg0, %c0_i32 : i32, i32
  }
  func.func @transform_6(%arg0: i32) -> (i32, i32) {
    %c0_i32 = arith.constant 0 : i32
    %c0_i32_0 = arith.constant 0 : i32
    return %arg0, %c0_i32 : i32, i32
  }
}

</mosaic_0001>

<bundles_post_ra>
// kernel: tpu_custom_call.1
= control target key start
LH: loop header
LB: loop body
LE: loop exit
PB: predicated region body
PF: predicated region fallthrough
CT: control target
= control target key end

     0   :  { %12 = vsyncpa [#allocation4], 0  ;;  %s2180_s0 = inlined_call_operand.vmem [shape: f32[16,128], index: 0, kind: input, shape index: {}]   ;;  %s2181_s1 = inlined_call_operand.hbm [shape: f32[16,8,128], index: 1, kind: input, shape index: {}]   ;;  %s2182_s2 = inlined_call_operand.hbm [shape: f32[128,128], index: 2, kind: input, shape index: {}]   ;;  %s2183_s3 = inlined_call_operand.vmem [shape: f32[1,128], index: 3, kind: input, shape index: {}]   ;;  %s2184_s4 = inlined_call_operand.vmem [shape: s32[16,1], index: 4, kind: input, shape index: {}]   ;;  %s2185_s5 = inlined_call_operand.hbm [shape: f32[16,128], index: 5, kind: output, shape index: {0}]   ;;  %s2186_s6 = inlined_call_operand.vmem [shape: f32[16,8], index: 6, kind: output, shape index: {1}]  }
   0x1   :  { %14 = vsyncpa [#allocation4 + $0x1], 0 }
   0x2   :  { %15 = vsyncpa [#allocation7], 0 }
   0x3   :  { %16 = vsyncpa [#allocation5], 0 }
   0x4   :  { %18 = vsyncpa [#allocation5 + $0x1], 0  ;;  %s1888_s21 = smov 0   ;;  %s1890_s22 = smov 0  }
   0x5   :  { %s1892_s23 = smov 0   ;;  %s1894_s24 = smov 0  }
   0x6 LB: > { %s1909_s25 = sadd.s32 4294967295, %s1842_s24   ;;  %s1483_s26 = sadd.s32 4294967294, %s1842_s24   ;;  %s1842_s24 = sphi %s1894_s24, %s2212_s24   ;;  %s1838_s23 = sphi %s1892_s23, %s2211_s23   ;;  %s1834_s22 = sphi %s1890_s22, %s2210_s22   ;;  %s1830_s21 = sphi %s1888_s21, %s2209_s21  }
   0x7   : > { %p70_p0 = scmp.ne.s32.totalorder %s1834_s22, %s1830_s21  ;;  %p2187_p1 = scmp.eq.s32.totalorder %s1909_s25, 0 }
   0x8   : > { %p168_p3 = scmp.eq.s32.totalorder %s1483_s26, 1  ;;  %p1484_p5 = scmp.ge.s32.totalorder %s1842_s24, 1 }
   0x9   : > { %p1918_p4 = por %p2187_p1, %p70_p0  ;;  %p201_p7 = scmp.lt.s32.totalorder %s1842_s24, 3 }
   0xa   : > { %p1923_p6 = por %p168_p3, %p70_p0  ;;  %s1844_s30 = smov [#allocation6]  }
   0xb   : > { %s2193_s27 = scalar_select %p1918_p4, 1, 0 }
   0xc   : > { %s2194_s28 = scalar_select %p1923_p6, 1, 0 }
   0xd   : > { %p1928_p8 = pnand %p1484_p5, %p201_p7  ;;  %s213_s7 = sshll.u32 %s1844_s30, 4  ;;  %s214_s7 = int_to_ptr.vmem [resolvable:$true] %s213_s7 }
   0xe   : > { %s1942_s9 = sadd.s32 1, %s1842_s24   ;;  %s57_s10 = sadd.s32 1, %s1838_s23 }
   0xf   : > { %s2195_s29 = scalar_select %p1928_p8, 1, 0 }
  0x10   : > { %p1643_p9 = pneg %p1928_p8  ;;  %s54_s11 = ssub.s32 %s1842_s24, %s1942_s9 }
  0x11   : > { %s1731_s12 = scalar_lea.vmem %s214_s7, 2048  ;;  %p1739_p5 = scmp.lt.s32.totalorder %s214_s7, %s214_s7 }
  0x12   : > { %p1937_p11 = pnand %p1643_p9, %p2187_p1  ;;  %p1732_p13 = scmp.ne.s32.totalorder %s214_s7, %s1731_s12 }
  0x13   : > { %p1740_p7 = scmp.lt.s32.totalorder %s1731_s12, %s1731_s12 }
  0x14   : > { %p1722_p12 = pneg %p1937_p11 }
  0x15   : > { %p1741_p10 = por %p1740_p7, %p1739_p5 }
  0x16   : > { %p1734_p0 = pnand %p1732_p13, %p1722_p12 }
  0x18   : > { %p1735_p3 = pneg %p1734_p0 }
  0x1a   : > { %p1742_p2 = pnand %p1741_p10, %p1735_p3 }
  0x1c   : > { %1745 = shalt.err (!%p1742_p2)
}
  0x1d   : > { %s2188_s13 = smov 128   ;;  %s2189_s14 = smov 8  }
  0x1e   : > { %1646 = dma.hbm_to_vmem [thread:$0]  (!%p1937_p11), %s2182_s2, 2048, %s214_s7, [#allocation7], %s2188_s13, %s2188_s13, %s2189_s14  }
  0x1f   : > { %p55_p2 = scmp.eq.s32.totalorder %s54_s11, 0  ;;  %p64_p9 = scmp.ne.s32.totalorder %s1838_s23, %s1834_s22 }
  0x20   : > { %p65_p10 = scmp.eq.s32.totalorder %s1842_s24, 0  ;;  %p1656_p12 = scmp.lt.s32.totalorder %s1842_s24, 2 }
  0x21   : > { %s1962_s17 = scalar_select %p55_p2, %s1838_s23, %s57_s10  }
  0x22   : > { %p66_p13 = por %p65_p10, %p64_p9  ;;  %p2197_p0 = scmp.eq.s32.totalorder %s1909_s25, 1 }
  0x23   : > { %s237_s19 = sand.u32 1, %s1838_s23   ;;  %s1510_s20 = sshll.u32 %s1842_s24, 10 }
  0x24   : > { %p1966_p3 = por %p2197_p0, %p64_p9  ;;  %s1487_s26 = sshll.u32 %s237_s19, 6 }
  0x25   : > { %s1975_s12 = scalar_lea.hbm %s2181_s1, %s1510_s20  ;;  %s241_s7 = scalar_lea.vmem [#allocation3], %s1487_s26 }
  0x26   : > { %s2198_s18 = scalar_select %p1966_p3, 1, 0 }
  0x27   : > { %s248_s10 = sshll.u32 %s241_s7, 4  ;;  %p1977_p11 = pnand %p1656_p12, %p66_p13  ;;  %s1981_s10 = int_to_ptr.vmem [resolvable:$true] %s248_s10 }
  0x28   : > { %s1983_s15 = scalar_lea.sflag [#allocation4], %s237_s19  ;;  %s1746_s16 = scalar_lea.hbm %s1975_s12, 1024 }
  0x29   : > { %p1747_p5 = scmp.ne.s32.totalorder %s1975_s12, %s1746_s16  ;;  %p1748_p7 = pneg %p1977_p11 }
  0x2a   : > { %s1751_s26 = scalar_lea.hbm %s2181_s1, 2048  ;;  %p1752_p10 = scmp.lt.s32.totalorder %s1975_s12, %s2181_s1 }
  0x2b   : > { %p1749_p2 = pnand %p1748_p7, %p1747_p5  ;;  %p1753_p12 = scmp.lt.s32.totalorder %s1751_s26, %s1746_s16 }
  0x2d   : > { %p1750_p9 = pneg %p1749_p2  ;;  %p1754_p13 = por %p1753_p12, %p1752_p10 }
  0x2f   : > { %p1755_p0 = pnand %p1754_p13, %p1750_p9 }
  0x31   : > { %1758 = shalt.err (!%p1755_p0)
}
  0x32   : > { %s1759_s19 = scalar_lea.vmem %s1981_s10, 1024  ;;  %s1847_s13 = smov [#allocation3]  }
  0x33   : > { %p1760_p1 = scmp.ne.s32.totalorder %s1981_s10, %s1759_s19  ;;  %s1764_s14 = sshll.u32 %s1847_s13, 4  ;;  %s1765_s14 = int_to_ptr.vmem [resolvable:$false] %s1764_s14 }
  0x34   : > { %s1766_s20 = scalar_lea.vmem %s1765_s14, 2048  ;;  %p1767_p2 = scmp.lt.s32.totalorder %s1981_s10, %s1765_s14 }
  0x35   : > { %p1762_p6 = pnand %p1760_p1, %p1748_p7  ;;  %p1768_p3 = scmp.lt.s32.totalorder %s1766_s20, %s1759_s19 }
  0x37   : > { %p1763_p5 = pneg %p1762_p6  ;;  %p1769_p4 = por %p1768_p3, %p1767_p2 }
  0x39   : > { %p1770_p8 = pnand %p1769_p4, %p1763_p5 }
  0x3b   : > { %1773 = shalt.err (!%p1770_p8)
}
  0x3c   : > { %s2200_s16 = smov 8   ;;  %s2201_s30 = smov 128  }
  0x3d   : > { %1650 = dma.hbm_to_vmem [thread:$0]  (!%p1977_p11), %s1975_s12, 1024, %s1981_s10, %s1983_s15, %s2201_s30, %s2201_s30, %s2200_s16  }
  0x3e   : > { %p2202_p1 = scmp.ne.s32.totalorder %s2195_s29, 0 }
  0x3f   : > { %s2010_s13 = sand.u32 (!%p2202_p1), 1, %s1834_s22   ;;  %p2203_p4 = scmp.ne.s32.totalorder (!%p2202_p1), %s2193_s27, 0 }
  0x40   : > { %267 = sbr.rel (%p2202_p1) target bundleno = 1036 (0x40c), region = 40  ;;  %s1491_s14 = sshll.u32 (!%p2202_p1), %s2010_s13, 6 }
  0x41   : > { %s270_s26 = scalar_lea.sflag (!%p2202_p1), [#allocation4], %s2010_s13  ;;  %s2014_s8 = scalar_lea.vmem (!%p2202_p1), [#allocation3], %s1491_s14 }
  0x45   : > { %1817 = dma.done.wait (%p2203_p4), %s270_s26, 1024  }
  0x46   : > { %1819 = vsyncadd (%p2203_p4), %s270_s26, 4294966272  ;;  %p2204_p6 = scmp.eq.s32.totalorder %s1909_s25, 0 }
  0x48   : > { %1821 = dma.done.wait (%p2204_p6), [#allocation7], 2048   ;;  %p2205_p8 = pmov %p2204_p6 }
  0x49   : > { %v347_v0 = vld [vmem:[#allocation6 + $0x78] sm:$0xff]  ;;  %v346_v1 = vld [vmem:[#allocation6 + $0x70] sm:$0xff]  ;;  %v345_v2 = vld [vmem:[#allocation6 + $0x68] sm:$0xff]  ;;  %v1848_v24 = vmov 0   ;;  %p318_p3 = scmp.lt.s32.totalorder %s1909_s25, 1  ;;  %v467_v27 = vlaneseq  ;;  %vm640_vm0 = vcmask 1041409  }
  0x4a   : > { %1823 = vsyncadd (%p2205_p8), [#allocation7], 4294965248  ;;  %1551 = vmatprep.subr.mxu0 %v347_v0  ;;  %v344_v3 = vld [vmem:[#allocation6 + $0x60] sm:$0xff]  ;;  %v343_v5 = vld [vmem:[#allocation6 + $0x58] sm:$0xff]  ;;  %1698 = vset.pattern.permute.xlu0 %v1848_v24  ;;  %v1849_v25 = vmov 1966171168  }
  0x4b   : > { %1552 = vmatpush3.msra.mxu0 %v347_v0  ;;  %v2025_v4 = vld [vmem:[%s2014_s8] sm:$0xff]  ;;  %v342_v6 = vld [vmem:[#allocation6 + $0x50] sm:$0xff]  ;;  %v341_v7 = vld [vmem:[#allocation6 + $0x48] sm:$0xff]  ;;  %s319_s27 = scalar_select %p318_p3, %s1909_s25, 1  ;;  %v465_v26 = vunpack.c.l.s4 %v1849_v25  ;;  %v2061_v29 = vshrl.u32 %v467_v27, 7  ;;  %vm642_vm1 = vcmask 1042434  }
  0x4c   : > { %1553 = vmatprep.subr.mxu0 %v346_v1  ;;  %1583 = vmatprep.mubr.f32.mxu0 %v2025_v4  ;;  %v340_v8 = vld [vmem:[#allocation6 + $0x40] sm:$0xff]  ;;  %v339_v9 = vld [vmem:[#allocation6 + $0x38] sm:$0xff]  ;;  %v338_v10 = vld [vmem:[#allocation6 + $0x30] sm:$0xff]  ;;  %vm644_vm2 = vcmask 1043459   ;;  %vm646_vm3 = vcmask 1044484   ;;  %vm648_vm4 = vcmask 1045509  }
  0x4d   : > { %1554 = vmatpush3.msra.mxu0 %v346_v1  ;;  %v337_v11 = vld [vmem:[#allocation6 + $0x28] sm:$0xff]  ;;  %v336_v12 = vld [vmem:[#allocation6 + $0x20] sm:$0xff]  ;;  %v335_v13 = vld [vmem:[#allocation6 + $0x18] sm:$0xff]  ;;  %s2058_s29 = sshll.u32 %s319_s27, 3  ;;  %v466_v28 = vunpack.c.0.s8 %v465_v26  ;;  %v514_v36 = vsub.s32 0, %v2061_v29  ;;  %vm650_vm5 = vcmask 1046534  }
  0x4e   : > { %1555 = vmatprep.subr.mxu0 %v345_v2  ;;  %v334_v14 = vld [vmem:[#allocation6 + $0x10] sm:$0xff]  ;;  %v333_v15 = vld [vmem:[#allocation6 + $0x8] sm:$0xff]  ;;  %v332_v16 = vld [vmem:[#allocation6] sm:$0xff]  ;;  %s321_s11 = scalar_lea.vmem %s2180_s0, %s2058_s29  ;;  %s326_s16 = scalar_lea.vmem %s2184_s4, %s2058_s29  ;;  %vm652_vm6 = vcmask 1047559   ;;  %vm655_vm7 = vcmask 64512   ;;  %vm1851_vm9 = vmmov 0  }
  0x4f   : > { %1556 = vmatpush3.msra.mxu0 %v345_v2  ;;  %v2029_v17 = vld [vmem:[%s2014_s8 + $0x8] sm:$0xff]  ;;  %v2032_v18 = vld [vmem:[%s2014_s8 + $0x10] sm:$0xff]  ;;  %v2037_v19 = vld [vmem:[%s2014_s8 + $0x18] sm:$0xff]  ;;  %v2068_v30 = vsub.s32 %v466_v28, %v2061_v29  ;;  %s330_s26 = scalar_lea.vmem %s2186_s6, %s2058_s29  ;;  %s1507_s27 = sshll.u32 %s1909_s25, 7 }
  0x50   : > { %1557 = vmatprep.subr.mxu0 %v344_v3  ;;  %v2040_v20 = vld [vmem:[%s2014_s8 + $0x20] sm:$0xff]  ;;  %v2045_v21 = vld [vmem:[%s2014_s8 + $0x28] sm:$0xff]  ;;  %v2048_v22 = vld [vmem:[%s2014_s8 + $0x30] sm:$0xff]  ;;  %s2142_s15 = scalar_lea.hbm %s2185_s5, %s1507_s27  ;;  %s1335_s25 = scalar_lea.sflag [#allocation5], %s2010_s13 }
  0x51   : > { %1558 = vmatpush3.msra.mxu0 %v344_v3  ;;  %v2053_v23 = vld [vmem:[%s2014_s8 + $0x38] sm:$0xff]  ;;  %s1493_s8 = sshll.u32 %s2010_s13, 3  ;;  %p2206_p7 = scmp.ne.s32.totalorder %s2198_s18, 0 }
  0x52   : > { %1559 = vmatprep.subr.mxu0 %v343_v5  ;;  %v331_v31 = vld [vmem:[%s321_s11] sm:$0xff]  ;;  %s311_s29 = scalar_lea.vmem [#allocation8], %s1493_s8  ;;  %s1852_s19 = smov [#allocation8]  }
  0x53   : > { %1560 = vmatpush3.msra.mxu0 %v343_v5  ;;  %v470_v32 = vrot.slane %v331_v31, %v2068_v30  ;;  %v463_v34 = vcombine.high %v331_v31, %v331_v31  ;;  %s1352_s12 = sshll.u32 %s311_s29, 4  ;;  %s1778_s20 = sshll.u32 %s1852_s19, 4  ;;  %s1353_s12 = int_to_ptr.vmem [resolvable:$true] %s1352_s12  ;;  %s1779_s20 = int_to_ptr.vmem [resolvable:$false] %s1778_s20 }
  0x54   : > { %1561 = vmatprep.subr.mxu0 %v342_v6  ;;  %s1774_s7 = scalar_lea.vmem %s1353_s12, 128  ;;  %p1781_p12 = scmp.lt.s32.totalorder %s1353_s12, %s1779_s20 }
  0x55   : > { %1562 = vmatpush3.msra.mxu0 %v342_v6  ;;  %v478_v33 = vcombine.high %v470_v32, %v470_v32  ;;  %v477_v37 = vrot.slane %v463_v34, %v2068_v30  ;;  %v486_v38 = vrot.slane %v470_v32, %v2068_v30  ;;  %v1497_v6 = vld [vmem:[%s2183_s3] ss:$0 sm:$0xff]  ;;  %p1775_p11 = scmp.ne.s32.totalorder %s1353_s12, %s1774_s7 }
  0x56   : > { %1563 = vmatprep.subr.mxu0 %v341_v7  ;;  %v658_v34 = vld [vmem:[%s326_s16] sm:$0xff]  ;;  %s1780_s16 = scalar_lea.vmem %s1779_s20, 256 }
  0x57   : > { %1564 = vmatpush3.msra.mxu0 %v341_v7  ;;  %v500_v35 = vrot.slane %v478_v33, %v2068_v30  ;;  %v479_v41 = vcombine.high %v477_v37, %v477_v37  ;;  %v515_v42 = vrot.slane %v486_v38, %v514_v36  ;;  %v508_v43 = vcombine.high %v486_v38, %v486_v38  ;;  %p1776_p9 = pnand %p1775_p11, %p2206_p7  ;;  %p1782_p13 = scmp.lt.s32.totalorder %s1780_s16, %s1774_s7 }
  0x58   : > { %1565 = vmatprep.subr.mxu0 %v340_v8  ;;  %v493_v51 = vrot.slane %v477_v37, %v2068_v30 }
  0x59   : > { %1566 = vmatpush3.msra.mxu0 %v340_v8  ;;  %v519_v39 = vrot.slane %v500_v35, %v514_v36  ;;  %v510_v40 = vcombine.high %v500_v35, %v500_v35  ;;  %v507_v47 = vrot.slane %v479_v41, %v2068_v30  ;;  %v523_v50 = vrot.slane %v508_v43, %v514_v36  ;;  %p1777_p10 = pneg %p1776_p9  ;;  %p1783_p0 = por %p1782_p13, %p1781_p12 }
  0x5a   : > { %1567 = vmatprep.subr.mxu0 %v339_v9  ;;  %v531_v58 = vrot.slane %v493_v51, %v514_v36  ;;  %v509_v59 = vcombine.high %v493_v51, %v493_v51  ;;  %v607_v35 = vand.u32 127, %v467_v27 }
  0x5b   : > { %1568 = vmatpush3.msra.mxu0 %v339_v9  ;;  %v527_v46 = vrot.slane %v510_v40, %v514_v36  ;;  %v535_v54 = vrot.slane %v507_v47, %v514_v36  ;;  %v511_v55 = vcombine.high %v507_v47, %v507_v47  ;;  %p1784_p5 = pnand %p1783_p0, %p1777_p10 }
  0x5c   : > { %1569 = vmatprep.subr.mxu0 %v338_v10  ;;  %v539_v1 = vrot.slane %v509_v59, %v514_v36  ;;  %v610_v37 = vsub.s32 %v607_v35, %v2061_v29 }
  0x5d   : > { %1570 = vmatpush3.msra.mxu0 %v338_v10  ;;  %v543_v62 = vrot.slane %v511_v55, %v514_v36 }
  0x5e   : > { %1571 = vmatprep.subr.mxu0 %v337_v11 }
  0x5f   : > { %1572 = vmatpush3.msra.mxu0 %v337_v11 }
  0x60   : > { %1573 = vmatprep.subr.mxu0 %v336_v12 }
  0x61   : > { %1574 = vmatpush3.msra.mxu0 %v336_v12 }
  0x62   : > { %1575 = vmatprep.subr.mxu0 %v335_v13 }
  0x63   : > { %1576 = vmatpush3.msra.mxu0 %v335_v13 }
  0x64   : > { %1577 = vmatprep.subr.mxu0 %v334_v14 }
  0x65   : > { %1578 = vmatpush3.msra.mxu0 %v334_v14 }
  0x66   : > { %1579 = vmatprep.subr.mxu0 %v333_v15 }
  0x67   : > { %1580 = vmatpush3.msra.mxu0 %v333_v15 }
  0x68   : > { %1581 = vmatprep.subr.mxu0 %v332_v16 }
  0x69   : > { %1582 = vmatpush3.msra.mxu0 %v332_v16 }
  0x6a   : > { %1584 = vmatmul.mubr.f32.vlgmr.msra.gmra.mxu0 %v2029_v17 }
  0x6b   : > { %1586 = vmatprep.mubr.f32.mxu0 %v2032_v18 }
  0x6e   : > { %1587 = vmatmul.mubr.f32.gmra.mxu0 %v2037_v19 }
  0x6f   : > { %1589 = vmatprep.mubr.f32.mxu0 %v2040_v20 }
  0x72   : > { %1590 = vmatmul.mubr.f32.gmra.mxu0 %v2045_v21 }
  0x73   : > { %1592 = vmatprep.mubr.f32.mxu0 %v2048_v22 }
  0x76   : > { %1593 = vmatmul.mubr.f32.gmra.mxu0 %v2053_v23 }
 0x12a   : > { %v1585_v44 = vpop.f32.mrf.mxu0 }
 0x12b   : > { %v553_v45 = vadd.f32 %v1585_v44, %v519_v39 }
 0x12c   : > { %v423_v48 = vpop.f32.mrf.mxu0 }
 0x12d   : > { %1700 = vtanh.f32 %v553_v45  ;;  %v552_v49 = vadd.f32 %v515_v42, %v423_v48 }
 0x12e   : > { %v1588_v52 = vpop.f32.mrf.mxu0 }
 0x12f   : > { %1702 = vtanh.f32 %v552_v49  ;;  %v555_v53 = vadd.f32 %v1588_v52, %v527_v46 }
 0x130   : > { %v433_v56 = vpop.f32.mrf.mxu0 }
 0x131   : > { %1704 = vtanh.f32 %v555_v53  ;;  %v554_v57 = vadd.f32 %v523_v50, %v433_v56 }
 0x132   : > { %v1591_v60 = vpop.f32.mrf.mxu0 }
 0x133   : > { %1706 = vtanh.f32 %v554_v57  ;;  %v557_v61 = vadd.f32 %v1591_v60, %v535_v54 }
 0x134   : > { %v443_v63 = vpop.f32.mrf.mxu0 }
 0x135   : > { %v556_v0 = vadd.f32 %v531_v58, %v443_v63  ;;  %1708 = vtanh.f32 %v557_v61 }
 0x136   : > { %v1594_v2 = vpop.f32.mrf.mxu0 }
 0x137   : > { %1710 = vtanh.f32 %v556_v0  ;;  %v559_v3 = vadd.f32 %v1594_v2, %v543_v62 }
 0x138   : > { %v453_v5 = vpop.f32.mrf.mxu0 }
 0x139   : > { %v558_v7 = vadd.f32 %v539_v1, %v453_v5  ;;  %1712 = vtanh.f32 %v559_v3  ;;  %v1850_v3 = vmov 0.0  }
 0x13a   : > { %v1701_v8 = vpop.eup %1700  ;;  %1595 = vmatprep.subr.mxu1 %v1850_v3  ;;  %1597 = vmatprep.mubr.msk.f32.mxu1 %vm1851_vm9, %v1850_v3 }
 0x13b   : > { %1714 = vtanh.f32 %v558_v7  ;;  %v575_v9 = vmul.f32 %v1701_v8, %v1497_v6  ;;  %1596 = vmatpush3.msra.mxu1 %v2025_v4 }
 0x13c   : > { %v1703_v10 = vpop.eup %1702  ;;  %1600 = vmatprep.subr.mxu1 %v1850_v3 }
 0x13d   : > { %584 = vadd.xlane.f32.xlu0 %v575_v9  ;;  %v574_v12 = vmul.f32 %v1703_v10, %v1497_v6 }
 0x13e   : > { %v1705_v11 = vpop.eup %1704 }
 0x13f   : > { %v577_v13 = vmul.f32 %v1705_v11, %v1497_v6 }
 0x140   : > { %v1707_v14 = vpop.eup %1706 }
 0x141   : > { %582 = vadd.xlane.f32.xlu0 %v574_v12  ;;  %588 = vadd.xlane.f32.xlu1 %v577_v13  ;;  %v576_v16 = vmul.f32 %v1707_v14, %v1497_v6 }
 0x142   : > { %v1709_v15 = vpop.eup %1708 }
 0x143   : > { %v579_v28 = vmul.f32 %v1709_v15, %v1497_v6 }
 0x144   : > { %v1711_v24 = vpop.eup %1710 }
 0x145   : > { %586 = vadd.xlane.f32.xlu1 %v576_v16  ;;  %v578_v25 = vmul.f32 %v1711_v24, %v1497_v6 }
 0x146   : > { %v1713_v26 = vpop.eup %1712 }
 0x147   : > { %590 = vadd.xlane.f32.xlu0 %v578_v25  ;;  %v581_v33 = vmul.f32 %v1713_v26, %v1497_v6 }
 0x148   : > { %v1715_v31 = vpop.eup %1714 }
 0x149   : > { %592 = vadd.xlane.f32.xlu1 %v579_v28  ;;  %v580_v32 = vmul.f32 %v1715_v31, %v1497_v6 }
 0x14b   : > { %594 = vadd.xlane.f32.xlu0 %v580_v32 }
 0x14d   : > { %596 = vadd.xlane.f32.xlu1 %v581_v33 }
 0x161   : > { %660 = vperm.xlu0 %1698, %v658_v34  }
 0x1c6   : > { %v585_v36 = vpop.xlane.xlu0 %584 }
 0x1c7   : > { %v615_v41 = vrot.slane %v585_v36, %v610_v37 }
 0x1ca   : > { %v583_v38 = vpop.xlane.xlu0 %582  ;;  %v589_v39 = vpop.xlane.xlu1 %588 }
 0x1cb   : > { %v611_v40 = vrot.slane %v583_v38, %v610_v37  ;;  %v623_v45 = vrot.slane %v589_v39, %v610_v37 }
 0x1cd   : > { %v641_v44 = vsel %vm640_vm0, %v615_v41, %v611_v40 }
 0x1ce   : > { %v587_v42 = vpop.xlane.xlu1 %586 }
 0x1cf   : > { %v619_v43 = vrot.slane %v587_v42, %v610_v37 }
 0x1d0   : > { %v591_v46 = vpop.xlane.xlu0 %590 }
 0x1d1   : > { %v643_v47 = vsel %vm642_vm1, %v619_v43, %v641_v44  ;;  %v627_v27 = vrot.slane %v591_v46, %v610_v37 }
 0x1d2   : > { %v645_v48 = vsel %vm644_vm2, %v623_v45, %v643_v47  ;;  %v593_v29 = vpop.xlane.xlu1 %592 }
 0x1d3   : > { %v647_v49 = vsel %vm646_vm3, %v627_v27, %v645_v48  ;;  %v631_v50 = vrot.slane %v593_v29, %v610_v37 }
 0x1d4   : > { %v595_v51 = vpop.xlane.xlu0 %594 }
 0x1d5   : > { %v649_v52 = vsel %vm648_vm4, %v631_v50, %v647_v49  ;;  %v635_v53 = vrot.slane %v595_v51, %v610_v37 }
 0x1d6   : > { %v597_v54 = vpop.xlane.xlu1 %596 }
 0x1d7   : > { %v651_v55 = vsel %vm650_vm5, %v635_v53, %v649_v52  ;;  %v639_v56 = vrot.slane %v597_v54, %v610_v37 }
 0x1d9   : > { %v653_v57 = vsel %vm652_vm6, %v639_v56, %v651_v55 }
 0x1da   : > { %656 = vst.msk [vmem:[#allocation2] sm:$0xff] %vm655_vm7, %v653_v57 }
 0x1dc   : > { %v661_v58 = vpop.permute.xlu0 %660 }
 0x1dd   : > { %vm662_vm8 = vcmp.lt.s32.totalorder %v607_v35, %v661_v58 }
 0x1e1   : > { %v657_v59 = vld [vmem:[#allocation2] sm:$0xff] }
 0x1e2   : > { %v663_v60 = vsel %vm662_vm8, %v657_v59, -1e+10 }
 0x1e3   : > { %v664_v61 = vsel %vm655_vm7, %v663_v60, -inf }
 0x1e4   : > { %665 = vmax.xlane.f32.xlu1 %v664_v61 }
 0x26d   : > { %v666_v62 = vpop.xlane.xlu1 %665 }
 0x26e   : > { %v667_v63 = vsub.f32 %v663_v60, %v666_v62 }
 0x270   : > { %v668_v0 = vmul.f32 1.442695, %v667_v63 }
 0x272   : > { %1716 = vpow2.f32 %v668_v0 }
 0x27f   : > { %v1717_v1 = vpop.eup %1716 }
 0x280   : > { %v670_v2 = vsel %vm655_vm7, %v1717_v1, 0.0 }
 0x281   : > { %671 = vadd.xlane.f32.xlu1 %v670_v2 }
 0x30a   : > { %v672_v5 = vpop.xlane.xlu1 %671 }
 0x30b   : > { %1718 = vrcp.f32 %v672_v5 }
 0x318   : > { %v1719_v6 = vpop.eup %1718 }
 0x319   : > { %v674_v7 = vmul.f32 %v1719_v6, %v1717_v1 }
 0x31b   : > { %1333 = vst.msk [vmem:[%s330_s26] sm:$0xff] %vm655_vm7, %v674_v7  ;;  %v683_v8 = vrot.slane %v674_v7, %v2068_v30  ;;  %v676_v12 = vcombine.high %v674_v7, %v674_v7 }
 0x31d   : > { %v691_v9 = vcombine.high %v683_v8, %v683_v8  ;;  %v699_v10 = vrot.slane %v683_v8, %v2068_v30  ;;  %v690_v13 = vrot.slane %v676_v12, %v2068_v30 }
 0x31f   : > { %1598 = vmatmul.mubr.msk.f32.vlgmr.msra.gmra.mxu1 %vm655_vm7, %v699_v10  ;;  %v713_v4 = vrot.slane %v691_v9, %v2068_v30  ;;  %v721_v11 = vcombine.high %v699_v10, %v699_v10  ;;  %v692_v14 = vcombine.high %v690_v13, %v690_v13 }
 0x320   : > { %1601 = vmatpush3.msra.mxu1 %v2029_v17  ;;  %1602 = vmatprep.mubr.msk.f32.mxu1 %vm1851_vm9, %v1850_v3 }
 0x321   : > { %1605 = vmatprep.subr.mxu1 %v1850_v3  ;;  %v723_v17 = vcombine.high %v713_v4, %v713_v4 }
 0x323   : > { %1603 = vmatmul.mubr.msk.f32.vlgmr.msra.gmra.mxu1 %vm655_vm7, %v713_v4 }
 0x324   : > { %1606 = vmatpush3.msra.mxu1 %v2032_v18  ;;  %1607 = vmatprep.mubr.msk.f32.mxu1 %vm1851_vm9, %v1850_v3  ;;  %v706_v18 = vrot.slane %v690_v13, %v2068_v30 }
 0x325   : > { %1610 = vmatprep.subr.mxu1 %v1850_v3 }
 0x327   : > { %1608 = vmatmul.mubr.msk.f32.vlgmr.msra.gmra.mxu1 %vm655_vm7, %v721_v11 }
 0x328   : > { %1611 = vmatpush3.msra.mxu1 %v2037_v19  ;;  %1612 = vmatprep.mubr.msk.f32.mxu1 %vm1851_vm9, %v1850_v3  ;;  %v720_v19 = vrot.slane %v692_v14, %v2068_v30 }
 0x329   : > { %1615 = vmatprep.subr.mxu1 %v1850_v3 }
 0x32b   : > { %1613 = vmatmul.mubr.msk.f32.vlgmr.msra.gmra.mxu1 %vm655_vm7, %v723_v17 }
 0x32c   : > { %1616 = vmatpush3.msra.mxu1 %v2040_v20  ;;  %1617 = vmatprep.mubr.msk.f32.mxu1 %vm1851_vm9, %v1850_v3  ;;  %v722_v20 = vcombine.high %v706_v18, %v706_v18 }
 0x32d   : > { %1620 = vmatprep.subr.mxu1 %v1850_v3 }
 0x32f   : > { %1618 = vmatmul.mubr.msk.f32.vlgmr.msra.gmra.mxu1 %vm655_vm7, %v706_v18 }
 0x330   : > { %1621 = vmatpush3.msra.mxu1 %v2045_v21  ;;  %1622 = vmatprep.mubr.msk.f32.mxu1 %vm1851_vm9, %v1850_v3  ;;  %v724_v21 = vcombine.high %v720_v19, %v720_v19 }
 0x331   : > { %1625 = vmatprep.subr.mxu1 %v1850_v3 }
 0x333   : > { %1623 = vmatmul.mubr.msk.f32.vlgmr.msra.gmra.mxu1 %vm655_vm7, %v720_v19 }
 0x334   : > { %1626 = vmatpush3.msra.mxu1 %v2048_v22  ;;  %1627 = vmatprep.mubr.msk.f32.mxu1 %vm1851_vm9, %v1850_v3 }
 0x335   : > { %1630 = vmatprep.subr.mxu1 %v1850_v3 }
 0x337   : > { %1628 = vmatmul.mubr.msk.f32.vlgmr.msra.gmra.mxu1 %vm655_vm7, %v722_v20 }
 0x338   : > { %1631 = vmatpush3.msra.mxu1 %v2053_v23  ;;  %1632 = vmatprep.mubr.msk.f32.mxu1 %vm1851_vm9, %v1850_v3 }
 0x33b   : > { %1633 = vmatmul.mubr.msk.f32.vlgmr.msra.gmra.mxu1 %vm655_vm7, %v724_v21 }
 0x3df   : > { %v801_v15 = vpop.f32.mrf.mxu1 }
 0x3e1   : > { %v1599_v30 = vpop.f32.mrf.mxu1 }
 0x3e3   : > { %v873_v16 = vpop.f32.mrf.mxu1 }
 0x3e4   : > { %v1317_v34 = vrot.slane %v873_v16, 7 }
 0x3e5   : > { %v1604_v24 = vpop.f32.mrf.mxu1 }
 0x3e6   : > { %v1318_v39 = vsel %vm640_vm0, %v1317_v34, %v801_v15 }
 0x3e7   : > { %v945_v25 = vpop.f32.mrf.mxu1 }
 0x3e8   : > { %v1319_v23 = vrot.slane %v945_v25, 6 }
 0x3e9   : > { %v1609_v22 = vpop.f32.mrf.mxu1 }
 0x3ea   : > { %v1320_v41 = vsel %vm642_vm1, %v1319_v23, %v1318_v39 }
 0x3eb   : > { %v1017_v26 = vpop.f32.mrf.mxu1 }
 0x3ec   : > { %v1321_v36 = vrot.slane %v1017_v26, 5 }
 0x3ed   : > { %v1614_v28 = vpop.f32.mrf.mxu1 }
 0x3ee   : > { %v1322_v44 = vsel %vm644_vm2, %v1321_v36, %v1320_v41 }
 0x3ef   : > { %v1089_v31 = vpop.f32.mrf.mxu1 }
 0x3f0   : > { %v1323_v37 = vrot.slane %v1089_v31, 4 }
 0x3f1   : > { %v1619_v32 = vpop.f32.mrf.mxu1 }
 0x3f2   : > { %v1324_v45 = vsel %vm646_vm3, %v1323_v37, %v1322_v44 }
 0x3f3   : > { %v1161_v33 = vpop.f32.mrf.mxu1 }
 0x3f4   : > { %v1325_v40 = vrot.slane %v1161_v33, 3 }
 0x3f5   : > { %v1624_v35 = vpop.f32.mrf.mxu1 }
 0x3f6   : > { %v1326_v47 = vsel %vm648_vm4, %v1325_v40, %v1324_v45 }
 0x3f7   : > { %v1233_v38 = vpop.f32.mrf.mxu1 }
 0x3f8   : > { %v1327_v42 = vrot.slane %v1233_v38, 2 }
 0x3f9   : > { %v1629_v43 = vpop.f32.mrf.mxu1 }
 0x3fa   : > { %v1328_v48 = vsel %vm650_vm5, %v1327_v42, %v1326_v47 }
 0x3fb   : > { %v1305_v46 = vpop.f32.mrf.mxu1 }
 0x3fc   : > { %v1329_v27 = vrot.slane %v1305_v46, 1 }
 0x3fd   : > { %v1634_v29 = vpop.f32.mrf.mxu1 }
 0x3fe   : > { %v1330_v49 = vsel %vm652_vm6, %v1329_v27, %v1328_v48 }
 0x3ff   : > { %1332 = vst [vmem:[%s311_s29] sm:$0xff] %v1330_v49 }
 0x400   : > { %1787 = shalt.err (!%p1784_p5)
}
 0x401   : > { %s1788_s30 = scalar_lea.hbm %s2142_s15, 128  ;;  %s1792_s26 = scalar_lea.hbm %s2185_s5, 256 }
 0x402   : > { %p1789_p2 = scmp.ne.s32.totalorder %s2142_s15, %s1788_s30  ;;  %p1793_p6 = scmp.lt.s32.totalorder %s2142_s15, %s2185_s5 }
 0x403   : > { %p1794_p8 = scmp.lt.s32.totalorder %s1792_s26, %s1788_s30 }
 0x404   : > { %p1790_p1 = pnand %p1789_p2, %p2206_p7 }
 0x405   : > { %p1795_p3 = por %p1794_p8, %p1793_p6 }
 0x406   : > { %p1791_p4 = pneg %p1790_p1 }
 0x408   : > { %p1796_p11 = pnand %p1795_p3, %p1791_p4 }
 0x40a   : > { %1799 = shalt.err (!%p1796_p11)
}
 0x40b   : > { %1641 = dma.vmem_to_hbm [thread:$0]  (%p2206_p7), %s1353_s12, 128, %s2142_s15, %s1335_s25  }
 0x40c PF: > { %s1367_s29 = sand.u32 1, %s1830_s21   ;;  %p2207_p9 = scmp.ne.s32.totalorder %s2194_s28, 0 }
 0x40d   : > { %p2208_p10 = scmp.ge.s32.totalorder %s1842_s24, 2  ;;  %s1368_s10 = scalar_lea.sflag [#allocation5], %s1367_s29 }
 0x40f   : > { %p1652_p12 = pnand %p2208_p10, %p2207_p9 }
 0x411   : > { %p1653_p13 = pneg %p1652_p12 }
 0x413   : > { %1825 = dma.done.wait (%p1653_p13), %s1368_s10, 128  }
 0x414   : > { %1827 = vsyncadd (%p1653_p13), %s1368_s10, 4294967168  ;;  %p21_p0 = scmp.ge.s32.totalorder %s1942_s9, 4   ;;  %s2209_s21 = smov %s1834_s22 }
 0x415   : > { %s2210_s22 = smov %s1838_s23  ;;  %s2211_s23 = smov %s1962_s17 }
 0x416   : > { %s2212_s24 = smov %s1942_s9  ;;  %23 = sbr.rel (!%p21_p0) target bundleno = 6 (0x6), region = 107 }
 0x41b   :  { %1380 = vsyncpa [#allocation4], 1 }
 0x41c   :  { %1382 = vsyncpa [#allocation4 + $0x1], 1 }
 0x41d   :  { %1383 = vsyncpa [#allocation7], 1 }
 0x41e   :  { %1384 = vsyncpa [#allocation5], 1 }
 0x41f   :  { %1386 = vsyncpa [#allocation5 + $0x1], 1 }

</bundles_post_ra>
